<compile_context>
chip_gen: v7x
topology: tpu7x:2x2x1
jax: 0.10.0
libtpu: 0.0.40
codegen_flags: <defaults>
</compile_context>

<pallas_src>
import functools

import jax
import jax.numpy as jnp
import numpy as np
from jax.experimental import pallas as pl
from jax.experimental.pallas import tpu as pltpu

_NEG = -1e30  # bias for padded vocab lanes so they can never win the argmax


def _round_up(x, m):
    return ((x + m - 1) // m) * m


def _sigmoid(x):
    # sigmoid(x) == 0.5*tanh(0.5*x) + 0.5 : one EUP (tanh) push instead of
    # exp + reciprocal.  Used both in-kernel and in the matched reference.
    return 0.5 * jnp.tanh(0.5 * x) + 0.5


def _choose_tile_m(tx, batch, target_rows=1024):
    """Timesteps per grid step: ~target_rows matmul rows per step (rows = B*TILE_M),
    clamped so small Tx isn't over-padded, and >=2 time tiles kept when possible
    so both v7x TensorCores get work."""
    tx8 = _round_up(tx, 8)
    per_tile = max(8, _round_up(max(target_rows // max(batch, 1), 8), 8))
    n_tiles = max(1, -(-tx8 // per_tile))
    if n_tiles == 1 and tx8 >= 16:
        n_tiles = 2
    return _round_up(-(-tx8 // n_tiles), 8)


def _music_kernel(x_ref, wih_ref, gh0_ref, c0_ref, fcw_ref, fcb_ref, out_ref, *, hg):
    """One time-tile: all B batches x TILE_M timesteps as matmul rows."""
    b, tm, ip = x_ref.shape

    # Gate pre-activations for all B*TILE_M rows in one MXU call
    # (bf16 operands, f32 accumulate).  gh0 = h0 @ W_hh^T + b_ih + b_hh is the
    # loop-invariant per-batch constant, added per batch after the matmul.
    x2 = x_ref[...].reshape(b * tm, ip)                       # bf16 (B*TILE_M, IP)
    gates = jnp.dot(x2, wih_ref[...], preferred_element_type=jnp.float32)
    gates = gates.reshape(b, tm, 4 * hg) + gh0_ref[...]       # (B, TILE_M, 4*HG) f32

    # Gate slices are 128-lane aligned (hg = per-gate lane-padded width).
    i_g = _sigmoid(gates[..., 0 * hg:1 * hg])
    f_g = _sigmoid(gates[..., 1 * hg:2 * hg])
    g_g = jnp.tanh(gates[..., 2 * hg:3 * hg])
    o_g = _sigmoid(gates[..., 3 * hg:4 * hg])

    c = f_g * c0_ref[...] + i_g * g_g                         # f32 (B, TILE_M, HG)
    h = o_g * jnp.tanh(c)                                     # padded hidden lanes = 0

    # fc: logits over the lane-padded vocabulary; padded lanes carry -1e30 bias.
    h2 = h.reshape(b * tm, hg).astype(fcw_ref.dtype)          # bf16 matmul operand
    logits = jnp.dot(h2, fcw_ref[...], preferred_element_type=jnp.float32)
    logits = logits.reshape(b, tm, ip) + fcb_ref[...]         # (B, TILE_M, IP) f32

    # argmax (first-occurrence tie-break) fused with one_hot, lane-dense store.
    lane = jax.lax.broadcasted_iota(jnp.int32, logits.shape, 2)
    maxv = jnp.max(logits, axis=-1, keepdims=True)
    cand = jnp.where(logits == maxv, lane, ip)                # sentinel ip for non-max
    idx = jnp.min(cand, axis=-1, keepdims=True)               # first argmax per row
    out_ref[...] = (lane == idx).astype(jnp.int32)            # (B, TILE_M, IP) int32


def music_inference_forward(X, params, *, target_rows=1024):
    """X: (B, Tx, input_size) float32 -> (Tx, B, 1, input_size) int32 one-hot."""
    B, Tx, I = X.shape
    H = params["w_hh"].shape[1]

    HG = _round_up(H, 128)                 # per-gate lane-padded hidden width
    IP = _round_up(I, 128)                 # lane-padded input / vocab width
    TILE_M = _choose_tile_m(Tx, B, target_rows)
    Tx_pad = _round_up(Tx, TILE_M)

    f32, bf16 = jnp.float32, jnp.bfloat16
    hi = jax.lax.Precision.HIGHEST

    # ---- loop-invariant precompute (plain XLA, once) ----
    # gates_h0 = h0 @ W_hh^T + b_ih + b_hh, laid out per-gate with lane padding.
    gh0 = (jnp.dot(params["h0"], params["w_hh"].T, precision=hi)
           + params["b_ih"] + params["b_hh"])                          # (B, 4H) f32
    gh0 = gh0.reshape(B, 4, H)
    gh0 = jnp.pad(gh0, ((0, 0), (0, 0), (0, HG - H)))
    gh0 = gh0.reshape(B, 1, 4 * HG).astype(f32)                        # (B, 1, 4*HG)

    # W_ih^T padded: (IP, 4*HG), each gate block lane-padded to HG; bf16 operand.
    wih = jnp.pad(params["w_ih"].T, ((0, IP - I), (0, 0)))             # (IP, 4H)
    wih = wih.reshape(IP, 4, H)
    wih = jnp.pad(wih, ((0, 0), (0, 0), (0, HG - H)))
    wih = wih.reshape(IP, 4 * HG).astype(bf16)

    c0 = jnp.pad(params["c0"], ((0, 0), (0, HG - H)))[:, None, :].astype(f32)  # (B,1,HG)

    fcw = jnp.pad(params["fc_w"].T, ((0, HG - H), (0, IP - I))).astype(bf16)   # (HG, IP)
    fcb = jnp.concatenate(
        [params["fc_b"].astype(f32), jnp.full((IP - I,), _NEG, f32)])[None, :]  # (1, IP)

    # Pad + cast input once (fused XLA op); bf16 halves x HBM/VMEM traffic.
    xp = jnp.pad(X, ((0, 0), (0, Tx_pad - Tx), (0, IP - I))).astype(bf16)  # (B,Tx_pad,IP)

    kernel = functools.partial(_music_kernel, hg=HG)

    out = pl.pallas_call(
        kernel,
        out_shape=jax.ShapeDtypeStruct((B, Tx_pad, IP), jnp.int32),
        grid_spec=pltpu.PrefetchScalarGridSpec(
            num_scalar_prefetch=0,
            grid=(Tx_pad // TILE_M,),                                   # 1-D: time tiles
            in_specs=[
                pl.BlockSpec((B, TILE_M, IP), lambda t: (0, t, 0)),     # x tile (bf16)
                pl.BlockSpec((IP, 4 * HG), lambda t: (0, 0)),           # W_ih (resident)
                pl.BlockSpec((B, 1, 4 * HG), lambda t: (0, 0, 0)),      # gates_h0 const
                pl.BlockSpec((B, 1, HG), lambda t: (0, 0, 0)),          # c0 const
                pl.BlockSpec((HG, IP), lambda t: (0, 0)),               # fc W (resident)
                pl.BlockSpec((1, IP), lambda t: (0, 0)),                # fc bias (+ -1e30 pad)
            ],
            out_specs=pl.BlockSpec((B, TILE_M, IP), lambda t: (0, t, 0)),
        ),
        compiler_params=pltpu.CompilerParams(
            dimension_semantics=("parallel",)),
    )(xp, wih, gh0, c0, fcw, fcb)

    # Un-pad slice (Tx_pad->Tx, IP->I) and the (B,Tx,.)->(Tx,B,.) transpose fuse
    # into a single XLA pass over the real output — no extra HBM round trip.
    out = out[:, :Tx, :I]
    return jnp.transpose(out, (1, 0, 2))[:, :, None, :]      # (Tx, B, 1, I)


def reference_forward(X, params, *, match_kernel_precision=True):
    """Pure-JAX replica of the PyTorch forward.

    With match_kernel_precision=True the matmul operands are quantized to bf16
    and sigmoid uses the same tanh formulation as the kernel, so argmax results
    can be compared exactly (review: exact f32-HIGHEST comparison can flip on
    near-ties once the kernel matmuls run in bf16)."""
    B, Tx, I = X.shape
    H = params["w_hh"].shape[1]
    hi = jax.lax.Precision.HIGHEST

    # Loop-invariant recurrent contribution, identical to the kernel wrapper.
    gh0 = (jnp.dot(params["h0"], params["w_hh"].T, precision=hi)
           + params["b_ih"] + params["b_hh"])
    c0 = params["c0"]

    if match_kernel_precision:
        cast = lambda a: a.astype(jnp.bfloat16)
        sig = _sigmoid
    else:
        cast = lambda a: a
        sig = jax.nn.sigmoid
    wih_t = cast(params["w_ih"].T)
    fcw_t = cast(params["fc_w"].T)

    outs = []
    for t in range(Tx):
        x = X[:, t, :]
        gates = jnp.dot(cast(x), wih_t, preferred_element_type=jnp.float32) + gh0
        i_g = sig(gates[:, 0 * H:1 * H])
        f_g = sig(gates[:, 1 * H:2 * H])
        g_g = jnp.tanh(gates[:, 2 * H:3 * H])
        o_g = sig(gates[:, 3 * H:4 * H])
        c = f_g * c0 + i_g * g_g
        h = o_g * jnp.tanh(c)
        logits = (jnp.dot(cast(h), fcw_t, preferred_element_type=jnp.float32)
                  + params["fc_b"])
        idx = jnp.argmax(logits, axis=-1)
        outs.append(jax.nn.one_hot(idx, I, dtype=jnp.int32)[:, None, :])
    return jnp.stack(outs)


def init_params(key, input_size, hidden_size, batch_size):
    """Deterministic synthetic init mimicking PyTorch LSTMCell/Linear shapes."""
    ks = jax.random.split(key, 9)
    k = 1.0 / np.sqrt(hidden_size)
    u = lambda kk, shape: jax.random.uniform(kk, shape, jnp.float32, -k, k)
    return {
        "w_ih": u(ks[0], (4 * hidden_size, input_size)),
        "w_hh": u(ks[1], (4 * hidden_size, hidden_size)),
        "b_ih": u(ks[2], (4 * hidden_size,)),
        "b_hh": u(ks[3], (4 * hidden_size,)),
        "fc_w": u(ks[4], (input_size, hidden_size)),
        "fc_b": u(ks[5], (input_size,)),
        "h0": jax.random.normal(ks[6], (batch_size, hidden_size), jnp.float32),
        "c0": jax.random.normal(ks[7], (batch_size, hidden_size), jnp.float32),
    }


if __name__ == "__main__":
    input_size = 90     # module default
    hidden_size = 64    # module default
    Tx = 8              # small sequence length for the demo
    batch_size = 2

    key = jax.random.PRNGKey(0)
    kp, kx = jax.random.split(key)
    params = init_params(kp, input_size, hidden_size, batch_size)
    X = jax.random.normal(kx, (batch_size, Tx, input_size), jnp.float32)

    out = jax.block_until_ready(music_inference_forward(X, params))
    ref = jax.block_until_ready(
        reference_forward(X, params, match_kernel_precision=True))

    assert out.shape == (Tx, batch_size, 1, input_size), out.shape
    np.testing.assert_array_equal(np.asarray(out), np.asarray(ref))
    print("KERNEL_OK")
</pallas_src>

<mosaic_0001>
module attributes {stable_mosaic.version = 11 : i64} {
  func.func @_music_kernel(%arg0: i32, %arg1: memref<2x8x128xbf16, #tpu.memory_space<vmem>>, %arg2: memref<128x512xbf16, #tpu.memory_space<vmem>>, %arg3: memref<2x1x512xf32, #tpu.memory_space<vmem>>, %arg4: memref<2x1x128xf32, #tpu.memory_space<vmem>>, %arg5: memref<128x128xbf16, #tpu.memory_space<vmem>>, %arg6: memref<1x128xf32, #tpu.memory_space<vmem>>, %arg7: memref<2x8x128xi32, #tpu.memory_space<vmem>>) attributes {dimension_semantics = [#tpu.dimension_semantics<parallel>], iteration_bounds = array<i64: 1>, scalar_prefetch = 0 : i64, scratch_operands = 0 : i64, tpu.core_type = #tpu.core_type<tc>, window_params = [{transform_indices = @transform_0, window_bounds = array<i64: 2, 8, 128>}, {pipeline_mode = #tpu.pipeline_mode<synchronous>, transform_indices = @transform_1, window_bounds = array<i64: 128, 512>}, {pipeline_mode = #tpu.pipeline_mode<synchronous>, transform_indices = @transform_2, window_bounds = array<i64: 2, 1, 512>}, {pipeline_mode = #tpu.pipeline_mode<synchronous>, transform_indices = @transform_3, window_bounds = array<i64: 2, 1, 128>}, {pipeline_mode = #tpu.pipeline_mode<synchronous>, transform_indices = @transform_4, window_bounds = array<i64: 128, 128>}, {pipeline_mode = #tpu.pipeline_mode<synchronous>, transform_indices = @transform_5, window_bounds = array<i64: 1, 128>}, {transform_indices = @transform_6, window_bounds = array<i64: 2, 8, 128>}]} {
    %c0 = arith.constant 0 : index
    %c0_0 = arith.constant 0 : index
    %c0_1 = arith.constant 0 : index
    %0 = vector.load %arg1[%c0, %c0_0, %c0_1] : memref<2x8x128xbf16, #tpu.memory_space<vmem>>, vector<2x8x128xbf16>
    %1 = vector.shape_cast %0 : vector<2x8x128xbf16> to vector<16x128xbf16>
    %c0_2 = arith.constant 0 : index
    %c0_3 = arith.constant 0 : index
    %2 = vector.load %arg2[%c0_2, %c0_3] : memref<128x512xbf16, #tpu.memory_space<vmem>>, vector<128x512xbf16>
    %cst = arith.constant dense<0.000000e+00> : vector<16x512xf32>
    %3 = tpu.matmul %1, %2, %cst {dimension_numbers = #tpu.dot_dimension_numbers<[1], [0], [0], [1], [0, 0, 1, 1], [], []>} : vector<16x128xbf16>, vector<128x512xbf16>, vector<16x512xf32> -> vector<16x512xf32>
    %4 = vector.shape_cast %3 : vector<16x512xf32> to vector<2x8x512xf32>
    %c0_4 = arith.constant 0 : index
    %c0_5 = arith.constant 0 : index
    %c0_6 = arith.constant 0 : index
    %5 = vector.load %arg3[%c0_4, %c0_5, %c0_6] : memref<2x1x512xf32, #tpu.memory_space<vmem>>, vector<2x1x512xf32>
    %6 = vector.broadcast %5 : vector<2x1x512xf32> to vector<2x8x512xf32>
    %7 = arith.addf %4, %6 : vector<2x8x512xf32>
    %8 = vector.extract_strided_slice %7 {offsets = [0, 0, 0], sizes = [2, 8, 128], strides = [1, 1, 1]} : vector<2x8x512xf32> to vector<2x8x128xf32>
    %cst_7 = arith.constant 5.000000e-01 : f32
    %9 = vector.broadcast %cst_7 : f32 to vector<2x8x128xf32>
    %10 = arith.mulf %9, %8 : vector<2x8x128xf32>
    %11 = math.tanh %10 : vector<2x8x128xf32>
    %cst_8 = arith.constant 5.000000e-01 : f32
    %12 = vector.broadcast %cst_8 : f32 to vector<2x8x128xf32>
    %13 = arith.mulf %12, %11 : vector<2x8x128xf32>
    %cst_9 = arith.constant 5.000000e-01 : f32
    %14 = vector.broadcast %cst_9 : f32 to vector<2x8x128xf32>
    %15 = arith.addf %13, %14 : vector<2x8x128xf32>
    %16 = vector.extract_strided_slice %7 {offsets = [0, 0, 128], sizes = [2, 8, 128], strides = [1, 1, 1]} : vector<2x8x512xf32> to vector<2x8x128xf32>
    %cst_10 = arith.constant 5.000000e-01 : f32
    %17 = vector.broadcast %cst_10 : f32 to vector<2x8x128xf32>
    %18 = arith.mulf %17, %16 : vector<2x8x128xf32>
    %19 = math.tanh %18 : vector<2x8x128xf32>
    %cst_11 = arith.constant 5.000000e-01 : f32
    %20 = vector.broadcast %cst_11 : f32 to vector<2x8x128xf32>
    %21 = arith.mulf %20, %19 : vector<2x8x128xf32>
    %cst_12 = arith.constant 5.000000e-01 : f32
    %22 = vector.broadcast %cst_12 : f32 to vector<2x8x128xf32>
    %23 = arith.addf %21, %22 : vector<2x8x128xf32>
    %24 = vector.extract_strided_slice %7 {offsets = [0, 0, 256], sizes = [2, 8, 128], strides = [1, 1, 1]} : vector<2x8x512xf32> to vector<2x8x128xf32>
    %25 = math.tanh %24 : vector<2x8x128xf32>
    %26 = vector.extract_strided_slice %7 {offsets = [0, 0, 384], sizes = [2, 8, 128], strides = [1, 1, 1]} : vector<2x8x512xf32> to vector<2x8x128xf32>
    %cst_13 = arith.constant 5.000000e-01 : f32
    %27 = vector.broadcast %cst_13 : f32 to vector<2x8x128xf32>
    %28 = arith.mulf %27, %26 : vector<2x8x128xf32>
    %29 = math.tanh %28 : vector<2x8x128xf32>
    %cst_14 = arith.constant 5.000000e-01 : f32
    %30 = vector.broadcast %cst_14 : f32 to vector<2x8x128xf32>
    %31 = arith.mulf %30, %29 : vector<2x8x128xf32>
    %cst_15 = arith.constant 5.000000e-01 : f32
    %32 = vector.broadcast %cst_15 : f32 to vector<2x8x128xf32>
    %33 = arith.addf %31, %32 : vector<2x8x128xf32>
    %c0_16 = arith.constant 0 : index
    %c0_17 = arith.constant 0 : index
    %c0_18 = arith.constant 0 : index
    %34 = vector.load %arg4[%c0_16, %c0_17, %c0_18] : memref<2x1x128xf32, #tpu.memory_space<vmem>>, vector<2x1x128xf32>
    %35 = vector.broadcast %34 : vector<2x1x128xf32> to vector<2x8x128xf32>
    %36 = arith.mulf %23, %35 : vector<2x8x128xf32>
    %37 = arith.mulf %15, %25 : vector<2x8x128xf32>
    %38 = arith.addf %36, %37 : vector<2x8x128xf32>
    %39 = math.tanh %38 : vector<2x8x128xf32>
    %40 = arith.mulf %33, %39 : vector<2x8x128xf32>
    %41 = vector.shape_cast %40 : vector<2x8x128xf32> to vector<16x128xf32>
    %42 = arith.truncf %41 : vector<16x128xf32> to vector<16x128xbf16>
    %c0_19 = arith.constant 0 : index
    %c0_20 = arith.constant 0 : index
    %43 = vector.load %arg5[%c0_19, %c0_20] : memref<128x128xbf16, #tpu.memory_space<vmem>>, vector<128x128xbf16>
    %cst_21 = arith.constant dense<0.000000e+00> : vector<16x128xf32>
    %44 = tpu.matmul %42, %43, %cst_21 {dimension_numbers = #tpu.dot_dimension_numbers<[1], [0], [0], [1], [0, 0, 1, 1], [], []>} : vector<16x128xbf16>, vector<128x128xbf16>, vector<16x128xf32> -> vector<16x128xf32>
    %45 = vector.shape_cast %44 : vector<16x128xf32> to vector<2x8x128xf32>
    %c0_22 = arith.constant 0 : index
    %c0_23 = arith.constant 0 : index
    %46 = vector.load %arg6[%c0_22, %c0_23] : memref<1x128xf32, #tpu.memory_space<vmem>>, vector<1x128xf32>
    %47 = vector.shape_cast %46 : vector<1x128xf32> to vector<1x1x128xf32>
    %48 = vector.broadcast %47 : vector<1x1x128xf32> to vector<2x8x128xf32>
    %49 = arith.addf %45, %48 : vector<2x8x128xf32>
    %50 = tpu.iota {dimensions = array<i32: 2>} : vector<2x8x128xi32>
    %cst_24 = arith.constant dense<0xFF800000> : vector<2x8xf32>
    %51 = vector.multi_reduction <maximumf>, %49, %cst_24 [2] : vector<2x8x128xf32> to vector<2x8xf32>
    %52 = vector.shape_cast %51 : vector<2x8xf32> to vector<2x8x1xf32>
    %53 = vector.broadcast %52 : vector<2x8x1xf32> to vector<2x8x128xf32>
    %54 = arith.cmpf oeq, %49, %53 : vector<2x8x128xf32>
    %c128_i32 = arith.constant 128 : i32
    %55 = vector.broadcast %c128_i32 : i32 to vector<2x8x128xi32>
    %56 = arith.select %54, %50, %55 : vector<2x8x128xi1>, vector<2x8x128xi32>
    %cst_25 = arith.constant dense<2147483647> : vector<2x8xi32>
    %57 = vector.multi_reduction <minsi>, %56, %cst_25 [2] : vector<2x8x128xi32> to vector<2x8xi32>
    %58 = vector.shape_cast %57 : vector<2x8xi32> to vector<2x8x1xi32>
    %59 = vector.broadcast %58 : vector<2x8x1xi32> to vector<2x8x128xi32>
    %60 = arith.cmpi eq, %50, %59 : vector<2x8x128xi32>
    %61 = arith.extui %60 : vector<2x8x128xi1> to vector<2x8x128xi32>
    %c0_26 = arith.constant 0 : index
    %c0_27 = arith.constant 0 : index
    %c0_28 = arith.constant 0 : index
    %62 = vector.load %arg7[%c0_26, %c0_27, %c0_28] : memref<2x8x128xi32, #tpu.memory_space<vmem>>, vector<2x8x128xi32>
    tpu.vector_store %arg7[%c0_26, %c0_27, %c0_28], %61 {strides = array<i32>} : memref<2x8x128xi32, #tpu.memory_space<vmem>>, vector<2x8x128xi32>,
    return
  }
  func.func @transform_0(%arg0: i32) -> (i32, i32, i32) {
    %c0_i32 = arith.constant 0 : i32
    %c0_i32_0 = arith.constant 0 : i32
    %c0_i32_1 = arith.constant 0 : i32
    return %c0_i32, %arg0, %c0_i32_0 : i32, i32, i32
  }
  func.func @transform_1(%arg0: i32) -> (i32, i32) {
    %c0_i32 = arith.constant 0 : i32
    %c0_i32_0 = arith.constant 0 : i32
    %c0_i32_1 = arith.constant 0 : i32
    return %c0_i32, %c0_i32_0 : i32, i32
  }
  func.func @transform_2(%arg0: i32) -> (i32, i32, i32) {
    %c0_i32 = arith.constant 0 : i32
    %c0_i32_0 = arith.constant 0 : i32
    %c0_i32_1 = arith.constant 0 : i32
    %c0_i32_2 = arith.constant 0 : i32
    return %c0_i32, %c0_i32_0, %c0_i32_1 : i32, i32, i32
  }
  func.func @transform_3(%arg0: i32) -> (i32, i32, i32) {
    %c0_i32 = arith.constant 0 : i32
    %c0_i32_0 = arith.constant 0 : i32
    %c0_i32_1 = arith.constant 0 : i32
    %c0_i32_2 = arith.constant 0 : i32
    return %c0_i32, %c0_i32_0, %c0_i32_1 : i32, i32, i32
  }
  func.func @transform_4(%arg0: i32) -> (i32, i32) {
    %c0_i32 = arith.constant 0 : i32
    %c0_i32_0 = arith.constant 0 : i32
    %c0_i32_1 = arith.constant 0 : i32
    return %c0_i32, %c0_i32_0 : i32, i32
  }
  func.func @transform_5(%arg0: i32) -> (i32, i32) {
    %c0_i32 = arith.constant 0 : i32
    %c0_i32_0 = arith.constant 0 : i32
    %c0_i32_1 = arith.constant 0 : i32
    return %c0_i32, %c0_i32_0 : i32, i32
  }
  func.func @transform_6(%arg0: i32) -> (i32, i32, i32) {
    %c0_i32 = arith.constant 0 : i32
    %c0_i32_0 = arith.constant 0 : i32
    %c0_i32_1 = arith.constant 0 : i32
    return %c0_i32, %arg0, %c0_i32_0 : i32, i32, i32
  }
}

</mosaic_0001>

<bundles_post_ra>
// kernel: tpu_custom_call.1
= control target key start
LH: loop header
LB: loop body
LE: loop exit
PB: predicated region body
PF: predicated region fallthrough
CT: control target
= control target key end

     0   :  { %11 = vsyncpa [#allocation3], 0  ;;  %s1068_s0 = inlined_call_operand.hbm [shape: bf16[2,8,128], index: 0, kind: input, shape index: {}]   ;;  %s1069_s1 = inlined_call_operand.hbm [shape: bf16[128,512], index: 1, kind: input, shape index: {}]   ;;  %s1070_s2 = inlined_call_operand.hbm [shape: f32[2,1,512], index: 2, kind: input, shape index: {}]   ;;  %s1071_s3 = inlined_call_operand.vmem [shape: f32[2,1,128], index: 3, kind: input, shape index: {}]   ;;  %s1072_s4 = inlined_call_operand.hbm [shape: bf16[128,128], index: 4, kind: input, shape index: {}]   ;;  %s1073_s5 = inlined_call_operand.vmem [shape: f32[1,128], index: 5, kind: input, shape index: {}]   ;;  %s1074_s6 = inlined_call_operand.hbm [shape: s32[2,8,128], index: 6, kind: output, shape index: {}]  }
   0x1   :  { %12 = vsyncpa [#allocation6], 0 }
   0x2   :  { %13 = vsyncpa [#allocation9], 0 }
   0x3   :  { %14 = vsyncpa [#allocation4], 0  ;;  %s928_s21 = smov [#allocation5]   ;;  %s810_s25 = scalar_lea.hbm %s1069_s1, 4096 }
   0x4   :  { %s32_s22 = sshll.u32 %s928_s21, 4  ;;  %p811_p0 = scmp.ne.s32.totalorder %s1069_s1, %s810_s25  ;;  %s33_s22 = int_to_ptr.vmem [resolvable:$true] %s32_s22 }
   0x5   :  { %p814_p1 = scmp.lt.u32.totalorder %s810_s25, %s1069_s1 }
   0x7   :  { %p816_p2 = pnand %p814_p1, %p811_p0 }
   0x9   :  { %819 = shalt.err (!%p816_p2)
}
   0xa   :  { %s820_s30 = scalar_lea.vmem %s33_s22, 4096  ;;  %p825_p4 = scmp.lt.s32.totalorder %s33_s22, %s33_s22 }
   0xb   :  { %p821_p3 = scmp.ne.s32.totalorder %s33_s22, %s820_s30  ;;  %p826_p5 = scmp.lt.s32.totalorder %s820_s30, %s820_s30 }
   0xd   :  { %p827_p6 = por %p826_p5, %p825_p4 }
   0xf   :  { %p828_p7 = pnand %p827_p6, %p821_p3 }
  0x11   :  { %831 = shalt.err (!%p828_p7)
}
  0x12   :  { %s929_s7 = smov 256   ;;  %s930_s8 = smov 16  }
  0x13   :  { %38 = dma.hbm_to_vmem [thread:$0]  %s1069_s1, 4096, %s33_s22, [#allocation6], %s929_s7, %s929_s7, %s930_s8  }
  0x14   :  { %s931_s11 = smov [#allocation2]   ;;  %s832_s15 = scalar_lea.hbm %s1068_s0, 128 }
  0x15   :  { %s20_s12 = sshll.u32 %s931_s11, 4  ;;  %p833_p8 = scmp.ne.s32.totalorder %s1068_s0, %s832_s15  ;;  %s21_s12 = int_to_ptr.vmem [resolvable:$true] %s20_s12 }
  0x16   :  { %p836_p9 = scmp.lt.u32.totalorder %s832_s15, %s1068_s0 }
  0x18   :  { %p838_p10 = pnand %p836_p9, %p833_p8 }
  0x1a   :  { %841 = shalt.err (!%p838_p10)
}
  0x1b   :  { %s842_s20 = scalar_lea.vmem %s21_s12, 128  ;;  %p847_p12 = scmp.lt.s32.totalorder %s21_s12, %s21_s12 }
  0x1c   :  { %p843_p11 = scmp.ne.s32.totalorder %s21_s12, %s842_s20  ;;  %p848_p13 = scmp.lt.s32.totalorder %s842_s20, %s842_s20 }
  0x1e   :  { %p849_p0 = por %p848_p13, %p847_p12 }
  0x20   :  { %p850_p1 = pnand %p849_p0, %p843_p11 }
  0x22   :  { %853 = shalt.err (!%p850_p1)
}
  0x23   :  { %s932_s1 = smov 64   ;;  %s933_s21 = smov 4  }
  0x24   :  { %26 = dma.hbm_to_vmem [thread:$0]  %s1068_s0, 128, %s21_s12, [#allocation3], %s932_s1, %s932_s1, %s933_s21  }
  0x25   :  { %s934_s24 = smov [#allocation7]   ;;  %s935_s26 = smov [#allocation8]  }
  0x26   :  { %s44_s25 = sshll.u32 %s934_s24, 4  ;;  %s58_s27 = sshll.u32 %s935_s26, 4  ;;  %s45_s25 = int_to_ptr.vmem [resolvable:$true] %s44_s25  ;;  %s1004_s27 = int_to_ptr.vmem [resolvable:$true] %s58_s27 }
  0x27   :  { %s854_s30 = scalar_lea.hbm %s1070_s2, 128 }
  0x28   :  { %p855_p2 = scmp.ne.s32.totalorder %s1070_s2, %s854_s30  ;;  %p858_p3 = scmp.lt.u32.totalorder %s854_s30, %s1070_s2 }
  0x2a   :  { %p860_p4 = pnand %p858_p3, %p855_p2 }
  0x2c   :  { %863 = shalt.err (!%p860_p4)
}
  0x2d   :  { %s864_s0 = scalar_lea.vmem %s45_s25, 128  ;;  %p869_p6 = scmp.lt.s32.totalorder %s45_s25, %s45_s25 }
  0x2e   :  { %p865_p5 = scmp.ne.s32.totalorder %s45_s25, %s864_s0  ;;  %p870_p7 = scmp.lt.s32.totalorder %s864_s0, %s864_s0 }
  0x30   :  { %p871_p8 = por %p870_p7, %p869_p6 }
  0x32   :  { %p872_p9 = pnand %p871_p8, %p865_p5 }
  0x34   :  { %875 = shalt.err (!%p872_p9)
}
  0x35   :  { %50 = dma.hbm_to_vmem [thread:$0]  %s1070_s2, 128, %s45_s25, [#allocation6], %s932_s1, %s932_s1, %s933_s21  }
  0x36   :  { %s876_s15 = scalar_lea.hbm %s1072_s4, 1024 }
  0x37   :  { %p877_p10 = scmp.ne.s32.totalorder %s1072_s4, %s876_s15  ;;  %p880_p11 = scmp.lt.u32.totalorder %s876_s15, %s1072_s4 }
  0x39   :  { %p882_p12 = pnand %p880_p11, %p877_p10 }
  0x3b   :  { %885 = shalt.err (!%p882_p12)
}
  0x3c   :  { %s886_s20 = scalar_lea.vmem %s1004_s27, 1024  ;;  %p891_p0 = scmp.lt.s32.totalorder %s1004_s27, %s1004_s27 }
  0x3d   :  { %p887_p13 = scmp.ne.s32.totalorder %s1004_s27, %s886_s20  ;;  %p892_p1 = scmp.lt.s32.totalorder %s886_s20, %s886_s20 }
  0x3f   :  { %p893_p2 = por %p892_p1, %p891_p0 }
  0x41   :  { %p894_p3 = pnand %p893_p2, %p887_p13 }
  0x43   :  { %897 = shalt.err (!%p894_p3)
}
  0x44   :  { %64 = dma.hbm_to_vmem [thread:$0]  %s1072_s4, 1024, %s1004_s27, [#allocation9], %s932_s1, %s932_s1, %s933_s21  }
  0x45   :  { %920 = dma.done.wait [#allocation3], 128  }
  0x46   :  { %921 = vsyncadd [#allocation3], 4294967168 }
  0x47   :  { %922 = dma.done.wait [#allocation6], 4224  }
  0x48   :  { %923 = vsyncadd [#allocation6], 4294963072 }
  0x49   :  { %924 = dma.done.wait [#allocation9], 1024  }
  0x4a   :  { %925 = vsyncadd [#allocation9], 4294966272  ;;  %v936_v0 = vmov 0   ;;  %v733_v1 = vld [vmem:[#allocation5 + $0x4] ss:$16 sps:$4 sm:$0xff]   ;;  %v778_v32 = vld [vmem:[#allocation2] sm:$0xff]   ;;  %v370_v43 = vlaneseq }
  0x4b   :  { %312 = vmatprep.mubr.bf16.mxu0 %v936_v0  ;;  %355 = vmatprep.mubr.bf16.mxu1 %v936_v0  ;;  %v735_v2 = vld [vmem:[#allocation5] ss:$16 sps:$4 sm:$0xff]   ;;  %v736_v3 = vld [vmem:[#allocation5 + $0x24] ss:$16 sps:$4 sm:$0xff]   ;;  %v738_v4 = vld [vmem:[#allocation5 + $0xc] ss:$16 sps:$4 sm:$0xff]  }
  0x4c   :  { %280 = vmatprep.subr.bf16.mxu0 %v733_v1  ;;  %v740_v5 = vld [vmem:[#allocation5 + $0x20] ss:$16 sps:$4 sm:$0xff]   ;;  %v741_v6 = vld [vmem:[#allocation5 + $0x8] ss:$16 sps:$4 sm:$0xff]   ;;  %v742_v7 = vld [vmem:[#allocation5 + $0x44] ss:$16 sps:$4 sm:$0xff]   ;;  %323 = vmatprep.subr.bf16.mxu1 %v738_v4 }
  0x4d   :  { %281 = vmatpush1.bf16.msra.mxu0 %v735_v2  ;;  %v744_v8 = vld [vmem:[#allocation5 + $0x2c] ss:$16 sps:$4 sm:$0xff]   ;;  %324 = vmatpush1.bf16.msra.mxu1 %v741_v6  ;;  %v747_v9 = vld [vmem:[#allocation5 + $0x28] ss:$16 sps:$4 sm:$0xff]   ;;  %v746_v10 = vld [vmem:[#allocation5 + $0x40] ss:$16 sps:$4 sm:$0xff]  }
  0x4e   :  { %282 = vmatprep.subr.bf16.mxu0 %v736_v3  ;;  %325 = vmatprep.subr.bf16.mxu1 %v744_v8  ;;  %v748_v11 = vld [vmem:[#allocation5 + $0x64] ss:$16 sps:$4 sm:$0xff]   ;;  %v750_v12 = vld [vmem:[#allocation5 + $0x4c] ss:$16 sps:$4 sm:$0xff]   ;;  %v753_v13 = vld [vmem:[#allocation5 + $0x48] ss:$16 sps:$4 sm:$0xff]  }
  0x4f   :  { %v752_v14 = vld [vmem:[#allocation5 + $0x60] ss:$16 sps:$4 sm:$0xff]   ;;  %v756_v15 = vld [vmem:[#allocation5 + $0x6c] ss:$16 sps:$4 sm:$0xff]   ;;  %v754_v16 = vld [vmem:[#allocation5 + $0x84] ss:$16 sps:$4 sm:$0xff]  }
  0x50   :  { %v758_v17 = vld [vmem:[#allocation5 + $0x80] ss:$16 sps:$4 sm:$0xff]   ;;  %v759_v18 = vld [vmem:[#allocation5 + $0x68] ss:$16 sps:$4 sm:$0xff]   ;;  %v762_v19 = vld [vmem:[#allocation5 + $0x8c] ss:$16 sps:$4 sm:$0xff]  }
  0x51   :  { %283 = vmatpush1.bf16.msra.mxu0 %v740_v5  ;;  %326 = vmatpush1.bf16.msra.mxu1 %v747_v9  ;;  %v760_v20 = vld [vmem:[#allocation5 + $0xa4] ss:$16 sps:$4 sm:$0xff]   ;;  %v765_v21 = vld [vmem:[#allocation5 + $0x88] ss:$16 sps:$4 sm:$0xff]   ;;  %v764_v22 = vld [vmem:[#allocation5 + $0xa0] ss:$16 sps:$4 sm:$0xff]  }
  0x52   :  { %284 = vmatprep.subr.bf16.mxu0 %v742_v7  ;;  %327 = vmatprep.subr.bf16.mxu1 %v750_v12  ;;  %v768_v23 = vld [vmem:[#allocation5 + $0xac] ss:$16 sps:$4 sm:$0xff]   ;;  %v766_v24 = vld [vmem:[#allocation5 + $0xc4] ss:$16 sps:$4 sm:$0xff]   ;;  %v770_v25 = vld [vmem:[#allocation5 + $0xc0] ss:$16 sps:$4 sm:$0xff]  }
  0x53   :  { %v771_v26 = vld [vmem:[#allocation5 + $0xa8] ss:$16 sps:$4 sm:$0xff]   ;;  %v772_v27 = vld [vmem:[#allocation5 + $0xe4] ss:$16 sps:$4 sm:$0xff]   ;;  %v774_v28 = vld [vmem:[#allocation5 + $0xcc] ss:$16 sps:$4 sm:$0xff]  }
  0x54   :  { %v777_v29 = vld [vmem:[#allocation5 + $0xc8] ss:$16 sps:$4 sm:$0xff]   ;;  %v776_v30 = vld [vmem:[#allocation5 + $0xe0] ss:$16 sps:$4 sm:$0xff]   ;;  %v779_v31 = vld [vmem:[#allocation5 + $0xec] ss:$16 sps:$4 sm:$0xff]  }
  0x55   :  { %285 = vmatpush1.bf16.msra.mxu0 %v746_v10  ;;  %328 = vmatpush1.bf16.msra.mxu1 %v753_v13  ;;  %v781_v33 = vld [vmem:[#allocation5 + $0xe8] ss:$16 sps:$4 sm:$0xff]   ;;  %v937_v35 = vmov 0.0   ;;  %v783_v36 = vld [vmem:[#allocation8 + $0x8] sm:$0xff]   ;;  %v785_v38 = vld [vmem:[#allocation8 + $0x18] sm:$0xff]   ;;  %vm938_vm0 = vmmov 0  }
  0x56   :  { %286 = vmatprep.subr.bf16.mxu0 %v748_v11  ;;  %329 = vmatprep.subr.bf16.mxu1 %v756_v15  ;;  %v782_v34 = vld [vmem:[#allocation8] sm:$0xff]   ;;  %v784_v37 = vld [vmem:[#allocation8 + $0x10] sm:$0xff]   ;;  %v787_v40 = vld [vmem:[#allocation8 + $0x28] sm:$0xff]   ;;  %v371_v44 = vshrl.u32 %v370_v43, 7 }
  0x57   :  { %v786_v39 = vld [vmem:[#allocation8 + $0x20] sm:$0xff]   ;;  %v788_v41 = vld [vmem:[#allocation8 + $0x30] sm:$0xff]   ;;  %v789_v42 = vld [vmem:[#allocation8 + $0x38] sm:$0xff]  }
  0x58   :  { %v372_v45 = vsub.s32 0, %v371_v44  ;;  %v366_v46 = vld [vmem:[#allocation7] sm:$0xf]  ;;  %v376_v47 = vsub.s32 1, %v371_v44  ;;  %v367_v48 = vld [vmem:[#allocation7 + $0x4] sm:$0xf] }
  0x59   :  { %287 = vmatpush1.bf16.msra.mxu0 %v752_v14  ;;  %330 = vmatpush1.bf16.msra.mxu1 %v759_v18  ;;  %v380_v50 = vsub.s32 2, %v371_v44  ;;  %v384_v58 = vsub.s32 3, %v371_v44 }
  0x5a   :  { %288 = vmatprep.subr.bf16.mxu0 %v754_v16  ;;  %331 = vmatprep.subr.bf16.mxu1 %v762_v19  ;;  %v373_v49 = vrot.slane %v366_v46, %v372_v45  ;;  %v377_v51 = vrot.slane %v366_v46, %v376_v47  ;;  %v389_v52 = vrot.slane %v367_v48, %v372_v45 }
  0x5b   :  { %v393_v54 = vrot.slane %v367_v48, %v376_v47  ;;  %v381_v57 = vrot.slane %v366_v46, %v380_v50  ;;  %v397_v2 = vrot.slane %v367_v48, %v380_v50  ;;  %v385_v8 = vrot.slane %v366_v46, %v384_v58 }
  0x5c   :  { %v401_v13 = vrot.slane %v367_v48, %v384_v58 }
  0x5d   :  { %289 = vmatpush1.bf16.msra.mxu0 %v758_v17  ;;  %332 = vmatpush1.bf16.msra.mxu1 %v765_v21 }
  0x5e   :  { %290 = vmatprep.subr.bf16.mxu0 %v760_v20  ;;  %333 = vmatprep.subr.bf16.mxu1 %v768_v23 }
  0x61   :  { %291 = vmatpush1.bf16.msra.mxu0 %v764_v22  ;;  %334 = vmatpush1.bf16.msra.mxu1 %v771_v26 }
  0x62   :  { %292 = vmatprep.subr.bf16.mxu0 %v766_v24  ;;  %335 = vmatprep.subr.bf16.mxu1 %v774_v28 }
  0x65   :  { %293 = vmatpush1.bf16.msra.mxu0 %v770_v25  ;;  %336 = vmatpush1.bf16.msra.mxu1 %v777_v29  ;;  %v679_v25 = vld [vmem:[%s1071_s3] ss:$0 sm:$0xff] }
  0x66   :  { %294 = vmatprep.subr.bf16.mxu0 %v772_v27  ;;  %337 = vmatprep.subr.bf16.mxu1 %v779_v31  ;;  %v680_v31 = vld [vmem:[%s1071_s3 + $0x1] ss:$0 sm:$0xff] }
  0x69   :  { %295 = vmatpush1.bf16.msra.mxu0 %v776_v30  ;;  %338 = vmatpush1.bf16.msra.mxu1 %v781_v33 }
  0x6a   :  { %699 = vmatprep.subr.bf16.mxu0 %v937_v35 }
  0x6c   :  { %313 = vmatmul.mubr.bf16.vlgmr.msra.gmra.mrb[0].mxu0 %v778_v32  ;;  %356 = vmatmul.mubr.bf16.vlgmr.msra.gmra.mrb[0].mxu1 %v778_v32 }
  0x6d   :  { %700 = vmatpush3.bf16.msra.mxu0 %v782_v34  ;;  %715 = vmatprep.mubr.msk.bf16.mxu0 %vm938_vm0, %v937_v35 }
  0x6e   :  { %701 = vmatprep.subr.bf16.mxu0 %v937_v35 }
  0x71   :  { %702 = vmatpush3.bf16.msra.mxu0 %v783_v36 }
  0x72   :  { %703 = vmatprep.subr.bf16.mxu0 %v937_v35 }
  0x75   :  { %704 = vmatpush3.bf16.msra.mxu0 %v784_v37 }
  0x76   :  { %705 = vmatprep.subr.bf16.mxu0 %v937_v35 }
  0x79   :  { %706 = vmatpush3.bf16.msra.mxu0 %v785_v38 }
  0x7a   :  { %707 = vmatprep.subr.bf16.mxu0 %v937_v35 }
  0x7d   :  { %708 = vmatpush3.bf16.msra.mxu0 %v786_v39 }
  0x7e   :  { %709 = vmatprep.subr.bf16.mxu0 %v937_v35 }
  0x81   :  { %710 = vmatpush3.bf16.msra.mxu0 %v787_v40 }
  0x82   :  { %711 = vmatprep.subr.bf16.mxu0 %v937_v35 }
  0x85   :  { %712 = vmatpush3.bf16.msra.mxu0 %v788_v41 }
  0x86   :  { %713 = vmatprep.subr.bf16.mxu0 %v937_v35 }
  0x89   :  { %714 = vmatpush3.bf16.msra.mxu0 %v789_v42 }
 0x13f   :  { %v314_v53 = vpop.f32.mrb[0].mxu0  ;;  %v357_v1 = vpop.f32.mrb[0].mxu1 }
 0x140   :  { %v410_v55 = vadd.f32 %v373_v49, %v314_v53  ;;  %v316_v56 = vpop.f32.mrb[1].mxu0  ;;  %v359_v5 = vpop.f32.mrb[1].mxu1  ;;  %v412_v7 = vadd.f32 %v381_v57, %v357_v1 }
 0x141   :  { %v411_v59 = vadd.f32 %v377_v51, %v316_v56  ;;  %v318_v60 = vpop.f32.mrb[2].mxu0  ;;  %v361_v9 = vpop.f32.mrb[2].mxu1  ;;  %v413_v14 = vadd.f32 %v385_v8, %v359_v5 }
 0x142   :  { %v418_v61 = vmul.f32 0.5, %v410_v55  ;;  %v414_v62 = vadd.f32 %v389_v52, %v318_v60  ;;  %v320_v63 = vpop.f32.mrb[3].mxu0  ;;  %v363_v11 = vpop.f32.mrb[3].mxu1  ;;  %v416_v12 = vadd.f32 %v397_v2, %v361_v9  ;;  %v689_v52 = vld [vmem:[%s1073_s5] ss:$0 sm:$0xff]  ;;  %s939_s5 = smov [#allocation10]  }
 0x143   :  { %v426_v3 = vmul.f32 0.5, %v411_v59  ;;  %v415_v4 = vadd.f32 %v393_v54, %v320_v63  ;;  %v417_v15 = vadd.f32 %v401_v13, %v363_v11  ;;  %v436_v16 = vmul.f32 0.5, %v413_v14  ;;  %s632_s25 = sshll.u32 %s939_s5, 4  ;;  %s633_s25 = int_to_ptr.vmem [resolvable:$true] %s632_s25 }
 0x144   :  { %790 = vtanh.f32 %v418_v61  ;;  %v419_v6 = vmul.f32 0.5, %v414_v62  ;;  %v584_v59 = vand.u32 127, %v370_v43  ;;  %s898_s26 = scalar_lea.vmem %s633_s25, 256  ;;  %p903_p5 = scmp.lt.s32.totalorder %s633_s25, %s633_s25 }
 0x145   :  { %792 = vtanh.f32 %v426_v3  ;;  %v427_v10 = vmul.f32 0.5, %v415_v4  ;;  %v437_v18 = vmul.f32 0.5, %v417_v15  ;;  %p899_p4 = scmp.ne.s32.totalorder %s633_s25, %s898_s26  ;;  %p904_p6 = scmp.lt.s32.totalorder %s898_s26, %s898_s26 }
 0x146   :  { %794 = vtanh.f32 %v419_v6 }
 0x147   :  { %796 = vtanh.f32 %v427_v10  ;;  %p905_p7 = por %p904_p6, %p903_p5 }
 0x148   :  { %798 = vtanh.f32 %v412_v7 }
 0x149   :  { %800 = vtanh.f32 %v416_v12  ;;  %p906_p8 = pnand %p905_p7, %p899_p4 }
 0x14a   :  { %802 = vtanh.f32 %v436_v16 }
 0x14b   :  { %804 = vtanh.f32 %v437_v18 }
 0x14e   :  { %v791_v17 = vpop.eup %790 }
 0x14f   :  { %v793_v19 = vpop.eup %792  ;;  %v422_v20 = vmul.f32 0.5, %v791_v17 }
 0x150   :  { %v795_v21 = vpop.eup %794  ;;  %v430_v22 = vmul.f32 0.5, %v793_v19 }
 0x151   :  { %v797_v23 = vpop.eup %796  ;;  %v424_v24 = vadd.f32 0.5, %v422_v20  ;;  %v423_v26 = vmul.f32 0.5, %v795_v21 }
 0x152   :  { %v799_v27 = vpop.eup %798  ;;  %v432_v28 = vadd.f32 0.5, %v430_v22  ;;  %v431_v29 = vmul.f32 0.5, %v797_v23 }
 0x153   :  { %v425_v30 = vadd.f32 0.5, %v423_v26  ;;  %v460_v32 = vmul.f32 %v799_v27, %v424_v24  ;;  %v801_v33 = vpop.eup %800 }
 0x154   :  { %v458_v34 = vmul.f32 %v679_v25, %v432_v28  ;;  %v433_v35 = vadd.f32 0.5, %v431_v29  ;;  %v803_v40 = vpop.eup %802 }
 0x155   :  { %v461_v36 = vmul.f32 %v801_v33, %v425_v30  ;;  %v805_v41 = vpop.eup %804  ;;  %v440_v42 = vmul.f32 0.5, %v803_v40 }
 0x156   :  { %v459_v37 = vmul.f32 %v680_v31, %v433_v35  ;;  %v462_v38 = vadd.f32 %v460_v32, %v458_v34  ;;  %v441_v44 = vmul.f32 0.5, %v805_v41 }
 0x157   :  { %v442_v45 = vadd.f32 0.5, %v440_v42 }
 0x158   :  { %806 = vtanh.f32 %v462_v38  ;;  %v463_v39 = vadd.f32 %v461_v36, %v459_v37  ;;  %v443_v48 = vadd.f32 0.5, %v441_v44 }
 0x15a   :  { %808 = vtanh.f32 %v463_v39 }
 0x162   :  { %v807_v46 = vpop.eup %806 }
 0x163   :  { %v466_v47 = vmul.f32 %v807_v46, %v442_v45 }
 0x164   :  { %v809_v49 = vpop.eup %808 }
 0x165   :  { %v467_v50 = vmul.f32 %v809_v49, %v443_v48 }
 0x167   :  { %v468_v51 = vpack.c.bf16 %v467_v50, %v466_v47 }
 0x169   :  { %716 = vmatmul.mubr.bf16.vlgmr.msra.gmra.mrb[4].mxu0 %v468_v51 }
 0x23c   :  { %v567_v53 = vpop.f32.mrb[4].mxu0 }
 0x23d   :  { %v581_v54 = vadd.f32 %v689_v52, %v567_v53  ;;  %v717_v55 = vpop.f32.mrb[5].mxu0 }
 0x23e   :  { %v570_v56 = vpop.f32.mrb[6].mxu0 }
 0x23f   :  { %585 = vmax.xlane.f32.xlu0 %v581_v54  ;;  %v718_v57 = vpop.f32.mrb[7].mxu0  ;;  %v582_v58 = vadd.f32 %v689_v52, %v570_v56 }
 0x243   :  { %587 = vmax.xlane.f32.xlu0 %v582_v58 }
 0x2cc   :  { %v586_v60 = vpop.xlane.xlu0 %585 }
 0x2cd   :  { %vm589_vm1 = vcmp.eq.f32.partialorder %v581_v54, %v586_v60 }
 0x2ce   :  { %v591_v61 = vsel %vm589_vm1, %v584_v59, 128 }
 0x2cf   :  { %v594_v62 = vshra.s32 %v591_v61, 16  ;;  %v593_v5 = vand.u32 65535, %v591_v61 }
 0x2d0   :  { %v588_v63 = vpop.xlane.xlu0 %587 }
 0x2d1   :  { %vm590_vm2 = vcmp.eq.f32.partialorder %v582_v58, %v588_v63  ;;  %v596_v1 = vcvt.s32.f32 %v594_v62  ;;  %v595_v8 = vcvt.s32.f32 %v593_v5 }
 0x2d2   :  { %v592_v2 = vsel %vm590_vm2, %v584_v59, 128 }
 0x2d3   :  { %597 = vmin.xlane.f32.xlu1 %v596_v1  ;;  %v608_v3 = vshra.s32 %v592_v2, 16  ;;  %v607_v6 = vand.u32 65535, %v592_v2 }
 0x2d5   :  { %v610_v4 = vcvt.s32.f32 %v608_v3  ;;  %v609_v10 = vcvt.s32.f32 %v607_v6 }
 0x2d7   :  { %611 = vmin.xlane.f32.xlu1 %v610_v4 }
 0x360   :  { %v598_v7 = vpop.xlane.xlu1 %597 }
 0x361   :  { %vm599_vm3 = vcmp.eq.f32.partialorder %v596_v1, %v598_v7  ;;  %v604_v12 = vcvt.f32.s32 %v598_v7 }
 0x362   :  { %v600_v9 = vsel %vm599_vm3, %v595_v8, inf }
 0x363   :  { %601 = vmin.xlane.f32.xlu0 %v600_v9  ;;  %v605_v14 = vshll.u32 %v604_v12, 16 }
 0x364   :  { %v612_v43 = vpop.xlane.xlu1 %611 }
 0x365   :  { %vm613_vm4 = vcmp.eq.f32.partialorder %v610_v4, %v612_v43  ;;  %v618_v15 = vcvt.f32.s32 %v612_v43 }
 0x366   :  { %v614_v11 = vsel %vm613_vm4, %v609_v10, inf }
 0x367   :  { %615 = vmin.xlane.f32.xlu1 %v614_v11  ;;  %v619_v19 = vshll.u32 %v618_v15, 16 }
 0x3f0   :  { %v602_v13 = vpop.xlane.xlu0 %601 }
 0x3f1   :  { %v603_v16 = vcvt.f32.s32 %v602_v13 }
 0x3f3   :  { %v606_v17 = vadd.s32 %v605_v14, %v603_v16 }
 0x3f4   :  { %v616_v18 = vpop.xlane.xlu1 %615 }
 0x3f5   :  { %vm621_vm5 = vcmp.eq.s32.totalorder %v584_v59, %v606_v17  ;;  %v617_v20 = vcvt.f32.s32 %v616_v18 }
 0x3f6   :  { %v623_v21 = vsel %vm621_vm5, 1, %v936_v0 }
 0x3f7   :  { %625 = vst [vmem:[#allocation10] sm:$0xff] %v623_v21  ;;  %v620_v22 = vadd.s32 %v619_v19, %v617_v20 }
 0x3f9   :  { %vm622_vm6 = vcmp.eq.s32.totalorder %v584_v59, %v620_v22 }
 0x3fa   :  { %v624_v23 = vsel %vm622_vm6, 1, %v936_v0 }
 0x3fb   :  { %626 = vst [vmem:[#allocation10 + $0x8] sm:$0xff] %v624_v23 }
 0x3fc   :  { %909 = shalt.err (!%p906_p8)
}
 0x3fd   :  { %s910_s29 = scalar_lea.hbm %s1074_s6, 256 }
 0x3fe   :  { %p911_p9 = scmp.ne.s32.totalorder %s1074_s6, %s910_s29  ;;  %p914_p10 = scmp.lt.u32.totalorder %s910_s29, %s1074_s6 }
 0x400   :  { %p916_p11 = pnand %p914_p10, %p911_p9 }
 0x402   :  { %919 = shalt.err (!%p916_p11)
}
 0x403   :  { %s940_s10 = smov 128   ;;  %s941_s0 = smov 8  }
 0x404   :  { %638 = dma.vmem_to_hbm [thread:$0]  %s633_s25, 256, %s1074_s6, [#allocation4], %s940_s10, %s940_s10, %s941_s0  }
 0x405   :  { %926 = dma.done.wait [#allocation4], 256  }
 0x406   :  { %927 = vsyncadd [#allocation4], 4294967040 }
 0x407   :  { %642 = vsyncpa [#allocation3], 1 }
 0x408   :  { %643 = vsyncpa [#allocation6], 1 }
 0x409   :  { %644 = vsyncpa [#allocation9], 1 }
 0x40a   :  { %645 = vsyncpa [#allocation4], 1 }

</bundles_post_ra>
